<compile_context>
chip_gen: v7x
topology: tpu7x:2x2x1
jax: 0.10.0
libtpu: 0.0.40
codegen_flags: <defaults>
</compile_context>

<pallas_src>
import functools

import jax
import jax.numpy as jnp
from jax.experimental import pallas as pl
from jax.experimental.pallas import tpu as pltpu

LN_EPS = 1e-5


def _round_up(x, m):
    return ((x + m - 1) // m) * m


def _vmem_capacity_bytes():
    """Physical VMEM of the local chip; conservative 64 MiB fallback."""
    try:
        info = pltpu.get_tpu_info()
        cap = int(getattr(info, "vmem_capacity_bytes", 64 << 20))
        if cap <= 0:
            cap = 64 << 20
        return cap
    except Exception:
        return 64 << 20


def _plan(n_rows, e, n_layers, act_itemsize, w_itemsize, carry_itemsize, have_res):
    """Pick (tile_n, weights_resident, vmem_limit_bytes) for this generation."""
    vmem_cap = _vmem_capacity_bytes()
    budget = min((vmem_cap * 3) // 4, 100 << 20)       # ~48 MiB on v7x, ~96 MiB on v5e/v6e

    n_w = 3 if have_res else 2
    bias_bytes = 4 * e * 4                              # (4, E) f32 slab per layer
    resident_w_bytes = 2 * n_layers * (n_w * e * e * w_itemsize + bias_bytes)
    stream_w_bytes = 2 * (n_w * e * e * w_itemsize + bias_bytes)

    weights_resident = resident_w_bytes <= budget // 2
    w_bytes = resident_w_bytes if weights_resident else stream_w_bytes

    # per-row VMEM: x in + out (double-buffered), residual stream (double-buffered),
    # plus the activation carry scratch.
    per_row = e * (act_itemsize * (6 if have_res else 4) + carry_itemsize)
    avail = max(budget - w_bytes, 0)

    tile = 1024
    while tile > 128 and tile * per_row > avail:
        tile //= 2

    rows_pad = _round_up(max(n_rows, 1), 128)
    tile = min(tile, rows_pad)
    # v7x megacore: make sure the "parallel" row axis has >= 2 tiles when there
    # is enough work, so both TensorCores are busy (near no-op on v5e/v6e).
    if rows_pad >= 256:
        tile = min(tile, _round_up((rows_pad + 1) // 2, 128))
    tile = max(tile, 128)

    vmem_est = w_bytes + tile * per_row + (1 << 20)
    vmem_limit = int(min(max(vmem_est * 5 // 4, 32 << 20), vmem_cap - (2 << 20)))
    return tile, weights_resident, vmem_limit


def _layernorm_f32(y, gamma, beta):
    """LayerNorm over the (true, unpadded) last dim. y is f32."""
    mean = jnp.mean(y, axis=-1, keepdims=True)
    cent = y - mean
    var = jnp.mean(cent * cent, axis=-1, keepdims=True)
    return cent * jax.lax.rsqrt(var + LN_EPS) * gamma + beta


def _fused_kernel(*refs, have_res, resident):
    """One (row_tile, layer) grid step.

    Refs (have_res=True):
      t_ref   (tile_n, E)                 input rows (consumed at layer 0)
      r_ref   (1, tile_n, E)              residual rows for this layer
      wma_ref (L|1, E, E)                 merger weight, tensor half (in, out)
      wmb_ref (L|1, E, E)                 merger weight, residual half
      vec_ref (L|1, 4, E) f32             [bm, gamma, beta, bl]
      wl_ref  (L|1, E, E)                 inner Linear(E,E) weight (in, out)
      o_ref   (1, tile_n, E)              per-layer output slab block
      act_ref (tile_n, E) carry dtype     VMEM activation carry across layers
    """
    if have_res:
        t_ref, r_ref, wma_ref, wmb_ref, vec_ref, wl_ref, o_ref, act_ref = refs
    else:
        t_ref, wma_ref, vec_ref, wl_ref, o_ref, act_ref = refs
        r_ref = wmb_ref = None

    layer = pl.program_id(1)

    @pl.when(layer == 0)
    def _():
        act_ref[...] = t_ref[...]

    def pick(ref):
        # resident: whole (L, ...) stack lives in VMEM -> dynamic index by layer;
        # streaming: this step's block is the single leading entry.
        return ref[layer] if resident else ref[0]

    wa = pick(wma_ref)                       # (E, E), MXU dtype
    wl = pick(wl_ref)                        # (E, E)
    vec = pick(vec_ref)                      # (4, E) f32
    bm, gamma, beta, bl = vec[0:1], vec[1:2], vec[2:3], vec[3:4]

    mm_dt = wa.dtype
    t = act_ref[...].astype(mm_dt)
    y = jnp.dot(t, wa, preferred_element_type=jnp.float32)
    if have_res:
        wb = pick(wmb_ref)
        y = y + jnp.dot(r_ref[0].astype(mm_dt), wb,
                        preferred_element_type=jnp.float32)
    y = y + bm

    yn = _layernorm_f32(y, gamma, beta)
    z = jnp.dot(yn.astype(mm_dt), wl, preferred_element_type=jnp.float32) + bl
    out = z + yn                             # dropout == identity (eval mode)

    act_ref[...] = out.astype(act_ref.dtype)  # carry to next layer in VMEM
    o_ref[0] = out.astype(o_ref.dtype)


def concative_submodel_forward(input_tensor, residuals, params, *,
                               tile_n=None, mxu_dtype=None):
    """JAX/Pallas equivalent of ConcativeSubmodel.forward (eval mode).

    input_tensor: (..., E)
    residuals:    None or list (len L) of tensors shaped like input_tensor
    params:       list of per-layer dicts with keys
                  'wm_t' (2E,E), 'bm' (1,E), 'gamma' (1,E), 'beta' (1,E),
                  'wl_t' (E,E), 'bl' (1,E)    (all weights stored (in, out))
    mxu_dtype:    optional dtype for the MXU operands (e.g. jnp.bfloat16 to run
                  bf16 matmuls with f32 accumulation even for f32 inputs).
    Returns (tensor, new_residuals) matching the PyTorch semantics.
    """
    orig_shape = tuple(input_tensor.shape)
    E = int(orig_shape[-1])
    L = len(params)
    dt = input_tensor.dtype
    mxu_dt = jnp.dtype(mxu_dtype) if mxu_dtype is not None else jnp.dtype(dt)
    carry_dt = dt
    have_res = residuals is not None

    x2d = input_tensor.reshape(-1, E)
    N = x2d.shape[0]

    tile, resident, vmem_limit = _plan(
        N, E, L,
        jnp.dtype(dt).itemsize, mxu_dt.itemsize, jnp.dtype(carry_dt).itemsize,
        have_res)
    if tile_n is not None:
        tile = tile_n

    N_pad = _round_up(N, tile)
    pn = N_pad - N

    # Stack per-layer weights; merger weight split into tensor / residual halves.
    wm_a = jnp.stack([p["wm_t"][:E] for p in params]).astype(mxu_dt)      # (L,E,E)
    wl = jnp.stack([p["wl_t"] for p in params]).astype(mxu_dt)            # (L,E,E)
    vecs = jnp.stack([jnp.stack([p["bm"].reshape(E), p["gamma"].reshape(E),
                                 p["beta"].reshape(E), p["bl"].reshape(E)])
                      for p in params]).astype(jnp.float32)               # (L,4,E)

    x_p = jnp.pad(x2d, ((0, pn), (0, 0))) if pn else x2d

    grid = (N_pad // tile, L)
    row_spec = pl.BlockSpec((tile, E), lambda i, j: (i, 0))
    lrow_spec = pl.BlockSpec((1, tile, E), lambda i, j: (j, i, 0))
    if resident:
        # Whole weight stack DMA'd once (constant block index) and reused.
        w_spec = pl.BlockSpec((L, E, E), lambda i, j: (0, 0, 0))
        v_spec = pl.BlockSpec((L, 4, E), lambda i, j: (0, 0, 0))
    else:
        w_spec = pl.BlockSpec((1, E, E), lambda i, j: (j, 0, 0))
        v_spec = pl.BlockSpec((1, 4, E), lambda i, j: (j, 0, 0))

    cparams = pltpu.CompilerParams(
        dimension_semantics=("parallel", "arbitrary"),   # rows across TCs; layers sequential
        vmem_limit_bytes=vmem_limit)
    out_shape = jax.ShapeDtypeStruct((L, N_pad, E), dt)
    scratch = [pltpu.VMEM((tile, E), carry_dt)]

    kernel = functools.partial(_fused_kernel, have_res=have_res, resident=resident)

    if have_res:
        wm_b = jnp.stack([p["wm_t"][E:] for p in params]).astype(mxu_dt)  # (L,E,E)
        r = jnp.stack([r_.reshape(-1, E) for r_ in residuals]).astype(mxu_dt)
        r_p = jnp.pad(r, ((0, 0), (0, pn), (0, 0))) if pn else r
        in_specs = [row_spec, lrow_spec, w_spec, w_spec, v_spec, w_spec]
        args = (x_p, r_p, wm_a, wm_b, vecs, wl)
    else:
        in_specs = [row_spec, w_spec, v_spec, w_spec]
        args = (x_p, wm_a, vecs, wl)

    out_stack = pl.pallas_call(
        kernel,
        out_shape=out_shape,
        grid_spec=pltpu.PrefetchScalarGridSpec(
            num_scalar_prefetch=0,
            grid=grid,
            in_specs=in_specs,
            out_specs=lrow_spec,
            scratch_shapes=scratch),
        compiler_params=cparams,
    )(*args)

    if pn:
        out_stack = out_stack[:, :N, :]
    out_full = out_stack.reshape((L,) + orig_shape)
    new_residuals = [out_full[i] for i in range(L)]
    return new_residuals[-1], new_residuals


def _reference_forward(input_tensor, residuals, params):
    """Pure-JAX reference for correctness checking."""
    tensor = input_tensor
    outs = []
    for i, p in enumerate(params):
        residual = jnp.zeros_like(tensor) if residuals is None else residuals[i]
        x = jnp.concatenate([tensor, residual], axis=-1)
        y = x @ p["wm_t"] + p["bm"][0]
        mean = jnp.mean(y, axis=-1, keepdims=True)
        var = jnp.mean((y - mean) ** 2, axis=-1, keepdims=True)
        yn = (y - mean) / jnp.sqrt(var + LN_EPS) * p["gamma"][0] + p["beta"][0]
        z = yn @ p["wl_t"] + p["bl"][0]
        tensor = z + yn
        outs.append(tensor)
    return tensor, outs


def make_params(key, embedding_width, num_layers):
    params = []
    E = embedding_width
    for _ in range(num_layers):
        key, k1, k2 = jax.random.split(key, 3)
        params.append({
            # merger: nn.Linear(2E, E); stored transposed (in, out)
            "wm_t": jax.random.normal(k1, (2 * E, E), jnp.float32) * 0.05,
            "bm": jnp.zeros((1, E), jnp.float32),
            # norm: nn.LayerNorm(E)
            "gamma": jnp.ones((1, E), jnp.float32),
            "beta": jnp.zeros((1, E), jnp.float32),
            # inner layer chosen as nn.Linear(E, E)
            "wl_t": jax.random.normal(k2, (E, E), jnp.float32) * 0.05,
            "bl": jnp.zeros((1, E), jnp.float32),
        })
    return params


if __name__ == "__main__":
    batch, seq, E = 2, 8, 32
    num_layers = 2

    key = jax.random.PRNGKey(0)
    key, kx, kp, kr = jax.random.split(key, 4)
    x = jax.random.normal(kx, (batch, seq, E), jnp.float32)
    params = make_params(kp, E, num_layers)

    # 1) residuals=None path (module substitutes zeros) -> no-residual fast kernel
    out, new_res = concative_submodel_forward(x, None, params)
    out = jax.block_until_ready(out)
    new_res = [jax.block_until_ready(r) for r in new_res]
    ref_out, ref_res = _reference_forward(x, None, params)
    assert out.shape == x.shape
    assert len(new_res) == num_layers
    assert jnp.allclose(out, ref_out, atol=1e-4, rtol=1e-4)
    for a, b in zip(new_res, ref_res):
        assert jnp.allclose(a, b, atol=1e-4, rtol=1e-4)

    # 2) residuals provided path -> full merger kernel (f32 MXU, strict check)
    res_in = [jax.random.normal(jax.random.fold_in(kr, i), (batch, seq, E), jnp.float32)
              for i in range(num_layers)]
    out2, new_res2 = concative_submodel_forward(x, res_in, params)
    out2 = jax.block_until_ready(out2)
    ref_out2, ref_res2 = _reference_forward(x, res_in, params)
    assert jnp.allclose(out2, ref_out2, atol=1e-4, rtol=1e-4)
    for a, b in zip(new_res2, ref_res2):
        assert jnp.allclose(a, b, atol=1e-4, rtol=1e-4)

    # 3) bf16 MXU mode (f32 inputs, bf16 matmul operands, f32 accumulation) -> loose check
    out3, _ = concative_submodel_forward(x, res_in, params, mxu_dtype=jnp.bfloat16)
    out3 = jax.block_until_ready(out3)
    assert bool(jnp.all(jnp.isfinite(out3)))
    assert float(jnp.max(jnp.abs(out3 - ref_out2))) < 0.25

    print("KERNEL_OK")
</pallas_src>

<mosaic_0001>
module attributes {stable_mosaic.version = 11 : i64} {
  func.func @_fused_kernel(%arg0: i32, %arg1: i32, %arg2: memref<128x32xf32, #tpu.memory_space<vmem>>, %arg3: memref<2x32x32xf32, #tpu.memory_space<vmem>>, %arg4: memref<2x4x32xf32, #tpu.memory_space<vmem>>, %arg5: memref<2x32x32xf32, #tpu.memory_space<vmem>>, %arg6: memref<1x128x32xf32, #tpu.memory_space<vmem>>, %arg7: memref<128x32xf32, #tpu.memory_space<vmem>>) attributes {dimension_semantics = [#tpu.dimension_semantics<parallel>, #tpu.dimension_semantics<arbitrary>], iteration_bounds = array<i64: 1, 2>, scalar_prefetch = 0 : i64, scratch_operands = 1 : i64, tpu.core_type = #tpu.core_type<tc>, window_params = [{transform_indices = @transform_0, window_bounds = array<i64: 128, 32>}, {pipeline_mode = #tpu.pipeline_mode<synchronous>, transform_indices = @transform_1, window_bounds = array<i64: 2, 32, 32>}, {pipeline_mode = #tpu.pipeline_mode<synchronous>, transform_indices = @transform_2, window_bounds = array<i64: 2, 4, 32>}, {pipeline_mode = #tpu.pipeline_mode<synchronous>, transform_indices = @transform_3, window_bounds = array<i64: 2, 32, 32>}, {transform_indices = @transform_4, window_bounds = array<i64: 1, 128, 32>}]} {
    %c0_i32 = arith.constant 0 : i32
    %0 = arith.cmpi eq, %arg1, %c0_i32 : i32
    %1 = arith.extui %0 : i1 to i32
    %c0_i32_0 = arith.constant 0 : i32
    %2 = arith.cmpi ne, %1, %c0_i32_0 : i32
    scf.if %2 {
      %c0_19 = arith.constant 0 : index
      %c0_20 = arith.constant 0 : index
      %48 = vector.load %arg2[%c0_19, %c0_20] : memref<128x32xf32, #tpu.memory_space<vmem>>, vector<128x32xf32>
      %c0_21 = arith.constant 0 : index
      %c0_22 = arith.constant 0 : index
      %49 = vector.load %arg7[%c0_21, %c0_22] : memref<128x32xf32, #tpu.memory_space<vmem>>, vector<128x32xf32>
      tpu.vector_store %arg7[%c0_21, %c0_22], %48 {strides = array<i32>} : memref<128x32xf32, #tpu.memory_space<vmem>>, vector<128x32xf32>,
    } else {
    }
    %3 = arith.index_cast %arg1 : i32 to index
    %c0 = arith.constant 0 : index
    %c0_1 = arith.constant 0 : index
    %4 = vector.load %arg3[%3, %c0, %c0_1] : memref<2x32x32xf32, #tpu.memory_space<vmem>>, vector<1x32x32xf32>
    %5 = vector.shape_cast %4 : vector<1x32x32xf32> to vector<32x32xf32>
    %6 = arith.index_cast %arg1 : i32 to index
    %c0_2 = arith.constant 0 : index
    %c0_3 = arith.constant 0 : index
    %7 = vector.load %arg5[%6, %c0_2, %c0_3] : memref<2x32x32xf32, #tpu.memory_space<vmem>>, vector<1x32x32xf32>
    %8 = vector.shape_cast %7 : vector<1x32x32xf32> to vector<32x32xf32>
    %9 = arith.index_cast %arg1 : i32 to index
    %c0_4 = arith.constant 0 : index
    %c0_5 = arith.constant 0 : index
    %10 = vector.load %arg4[%9, %c0_4, %c0_5] : memref<2x4x32xf32, #tpu.memory_space<vmem>>, vector<1x4x32xf32>
    %11 = vector.shape_cast %10 : vector<1x4x32xf32> to vector<4x32xf32>
    %12 = vector.extract_strided_slice %11 {offsets = [0, 0], sizes = [1, 32], strides = [1, 1]} : vector<4x32xf32> to vector<1x32xf32>
    %13 = vector.extract_strided_slice %11 {offsets = [1, 0], sizes = [1, 32], strides = [1, 1]} : vector<4x32xf32> to vector<1x32xf32>
    %14 = vector.extract_strided_slice %11 {offsets = [2, 0], sizes = [1, 32], strides = [1, 1]} : vector<4x32xf32> to vector<1x32xf32>
    %15 = vector.extract_strided_slice %11 {offsets = [3, 0], sizes = [1, 32], strides = [1, 1]} : vector<4x32xf32> to vector<1x32xf32>
    %c0_6 = arith.constant 0 : index
    %c0_7 = arith.constant 0 : index
    %16 = vector.load %arg7[%c0_6, %c0_7] : memref<128x32xf32, #tpu.memory_space<vmem>>, vector<128x32xf32>
    %cst = arith.constant dense<0.000000e+00> : vector<128x32xf32>
    %17 = tpu.matmul %16, %5, %cst {dimension_numbers = #tpu.dot_dimension_numbers<[1], [0], [0], [1], [0, 0, 1, 1], [], []>} : vector<128x32xf32>, vector<32x32xf32>, vector<128x32xf32> -> vector<128x32xf32>
    %18 = vector.broadcast %12 : vector<1x32xf32> to vector<128x32xf32>
    %19 = arith.addf %17, %18 : vector<128x32xf32>
    %cst_8 = arith.constant dense<0.000000e+00> : vector<128xf32>
    %20 = vector.multi_reduction <add>, %19, %cst_8 [1] : vector<128x32xf32> to vector<128xf32>
    %21 = vector.shape_cast %20 : vector<128xf32> to vector<128x1xf32>
    %cst_9 = arith.constant 3.200000e+01 : f32
    %22 = vector.broadcast %cst_9 : f32 to vector<128x1xf32>
    %23 = arith.divf %21, %22 : vector<128x1xf32>
    %24 = vector.broadcast %23 : vector<128x1xf32> to vector<128x32xf32>
    %25 = arith.subf %19, %24 : vector<128x32xf32>
    %26 = arith.mulf %25, %25 : vector<128x32xf32>
    %cst_10 = arith.constant dense<0.000000e+00> : vector<128xf32>
    %27 = vector.multi_reduction <add>, %26, %cst_10 [1] : vector<128x32xf32> to vector<128xf32>
    %28 = vector.shape_cast %27 : vector<128xf32> to vector<128x1xf32>
    %cst_11 = arith.constant 3.200000e+01 : f32
    %29 = vector.broadcast %cst_11 : f32 to vector<128x1xf32>
    %30 = arith.divf %28, %29 : vector<128x1xf32>
    %cst_12 = arith.constant 9.99999974E-6 : f32
    %31 = vector.broadcast %cst_12 : f32 to vector<128x1xf32>
    %32 = arith.addf %30, %31 : vector<128x1xf32>
    %33 = math.rsqrt %32 : vector<128x1xf32>
    %34 = vector.broadcast %33 : vector<128x1xf32> to vector<128x32xf32>
    %35 = arith.mulf %25, %34 : vector<128x32xf32>
    %36 = vector.broadcast %13 : vector<1x32xf32> to vector<128x32xf32>
    %37 = arith.mulf %35, %36 : vector<128x32xf32>
    %38 = vector.broadcast %14 : vector<1x32xf32> to vector<128x32xf32>
    %39 = arith.addf %37, %38 : vector<128x32xf32>
    %cst_13 = arith.constant dense<0.000000e+00> : vector<128x32xf32>
    %40 = tpu.matmul %39, %8, %cst_13 {dimension_numbers = #tpu.dot_dimension_numbers<[1], [0], [0], [1], [0, 0, 1, 1], [], []>} : vector<128x32xf32>, vector<32x32xf32>, vector<128x32xf32> -> vector<128x32xf32>
    %41 = vector.broadcast %15 : vector<1x32xf32> to vector<128x32xf32>
    %42 = arith.addf %40, %41 : vector<128x32xf32>
    %43 = arith.addf %42, %39 : vector<128x32xf32>
    %c0_14 = arith.constant 0 : index
    %c0_15 = arith.constant 0 : index
    %44 = vector.load %arg7[%c0_14, %c0_15] : memref<128x32xf32, #tpu.memory_space<vmem>>, vector<128x32xf32>
    tpu.vector_store %arg7[%c0_14, %c0_15], %43 {strides = array<i32>} : memref<128x32xf32, #tpu.memory_space<vmem>>, vector<128x32xf32>,
    %c0_16 = arith.constant 0 : index
    %c0_17 = arith.constant 0 : index
    %c0_18 = arith.constant 0 : index
    %45 = vector.load %arg6[%c0_16, %c0_17, %c0_18] : memref<1x128x32xf32, #tpu.memory_space<vmem>>, vector<1x128x32xf32>
    %46 = vector.shape_cast %45 : vector<1x128x32xf32> to vector<128x32xf32>
    %47 = vector.shape_cast %43 : vector<128x32xf32> to vector<1x128x32xf32>
    tpu.vector_store %arg6[%c0_16, %c0_17, %c0_18], %47 {strides = array<i32>} : memref<1x128x32xf32, #tpu.memory_space<vmem>>, vector<1x128x32xf32>,
    return
  }
  func.func @transform_0(%arg0: i32, %arg1: i32) -> (i32, i32) {
    %c0_i32 = arith.constant 0 : i32
    %c0_i32_0 = arith.constant 0 : i32
    return %arg0, %c0_i32 : i32, i32
  }
  func.func @transform_1(%arg0: i32, %arg1: i32) -> (i32, i32, i32) {
    %c0_i32 = arith.constant 0 : i32
    %c0_i32_0 = arith.constant 0 : i32
    %c0_i32_1 = arith.constant 0 : i32
    %c0_i32_2 = arith.constant 0 : i32
    return %c0_i32, %c0_i32_0, %c0_i32_1 : i32, i32, i32
  }
  func.func @transform_2(%arg0: i32, %arg1: i32) -> (i32, i32, i32) {
    %c0_i32 = arith.constant 0 : i32
    %c0_i32_0 = arith.constant 0 : i32
    %c0_i32_1 = arith.constant 0 : i32
    %c0_i32_2 = arith.constant 0 : i32
    return %c0_i32, %c0_i32_0, %c0_i32_1 : i32, i32, i32
  }
  func.func @transform_3(%arg0: i32, %arg1: i32) -> (i32, i32, i32) {
    %c0_i32 = arith.constant 0 : i32
    %c0_i32_0 = arith.constant 0 : i32
    %c0_i32_1 = arith.constant 0 : i32
    %c0_i32_2 = arith.constant 0 : i32
    return %c0_i32, %c0_i32_0, %c0_i32_1 : i32, i32, i32
  }
  func.func @transform_4(%arg0: i32, %arg1: i32) -> (i32, i32, i32) {
    %c0_i32 = arith.constant 0 : i32
    %c0_i32_0 = arith.constant 0 : i32
    return %arg1, %arg0, %c0_i32 : i32, i32, i32
  }
}

</mosaic_0001>

<bundles_post_ra>
// kernel: tpu_custom_call.1
= control target key start
LH: loop header
LB: loop body
LE: loop exit
PB: predicated region body
PF: predicated region fallthrough
CT: control target
= control target key end

     0   :  { %s1342_s15 = smov 0   ;;  %s1344_s16 = smov 0   ;;  %s1844_s0 = inlined_call_operand.vmem [shape: f32[128,32], index: 0, kind: input, shape index: {}]   ;;  %s1845_s1 = inlined_call_operand.vmem [shape: f32[2,32,32], index: 1, kind: input, shape index: {}]   ;;  %s1846_s2 = inlined_call_operand.vmem [shape: f32[2,4,32], index: 2, kind: input, shape index: {}]   ;;  %s1847_s3 = inlined_call_operand.vmem [shape: f32[2,32,32], index: 3, kind: input, shape index: {}]   ;;  %s1848_s4 = inlined_call_operand.vmem [shape: f32[2,128,32], index: 4, kind: output, shape index: {}]  }
   0x1   :  { %s1346_s17 = smov 0  }
   0x2 LB: > { %s23_s18 = sadd.s32 1, %s1311_s16  ;;  %p1076_p0 = scmp.ge.s32.totalorder %s1315_s17, 1  ;;  %s1315_s17 = sphi %s1346_s17, %s14_s17   ;;  %s1311_s16 = sphi %s1344_s16, %s1850_s16   ;;  %s1307_s15 = sphi %s1342_s15, %s1849_s15  }
   0x3   : > { %p24_p1 = scmp.ge.s32.totalorder %s23_s18, 2  ;;  %p177_p2 = scmp.lt.s32.totalorder %s1315_s17, 3 }
   0x5   : > { %s1852_s18 = smov (%p24_p1, %s23_s18), 0  ;;  %p178_p3 = pnand %p1076_p0, %p177_p2 }
   0x6   : > { %p214_p4 = scmp.lt.s32.totalorder (!%p178_p3), %s1307_s15, 1  ;;  %p1079_p5 = scmp.ne.s32.totalorder (!%p178_p3), %s1307_s15, 0 }
   0x7   : > { %181 = sbr.rel (%p178_p3) target bundleno = 815 (0x32f), region = 36 }
   0xe   : > { %s215_s19 = scalar_select %p214_p4, %s1307_s15, 1 }
   0xf   : > { %226 = sbr.rel (%p1079_p5) target bundleno = 24 (0x18), region = 40  ;;  %v227_v0 = vld [vmem:[%s1844_s0] sm:$0xff] (!%p1079_p5)  ;;  %vm243_vm0 = vcmask (!%p1079_p5), 261120   ;;  %v228_v1 = vld [vmem:[%s1844_s0 + $0x8] sm:$0xff] (!%p1079_p5)  ;;  %v229_v2 = vld [vmem:[%s1844_s0 + $0x10] sm:$0xff] (!%p1079_p5) }
  0x10   : > { %s1116_s20 = sshll.u32 %s215_s19, 7  ;;  %244 = vst.msk [vmem:[#allocation2] sm:$0xff] (!%p1079_p5), %vm243_vm0, %v227_v0  ;;  %245 = vst.msk [vmem:[#allocation2 + $0x8] sm:$0xff] (!%p1079_p5), %vm243_vm0, %v228_v1  ;;  %v230_v3 = vld [vmem:[%s1844_s0 + $0x18] sm:$0xff] (!%p1079_p5)  ;;  %v231_v4 = vld [vmem:[%s1844_s0 + $0x20] sm:$0xff] (!%p1079_p5) }
  0x11   : > { %s1367_s23 = scalar_lea.vmem %s1848_s4, %s1116_s20  ;;  %246 = vst.msk [vmem:[#allocation2 + $0x10] sm:$0xff] (!%p1079_p5), %vm243_vm0, %v229_v2  ;;  %v232_v5 = vld [vmem:[%s1844_s0 + $0x28] sm:$0xff] (!%p1079_p5)  ;;  %247 = vst.msk [vmem:[#allocation2 + $0x18] sm:$0xff] (!%p1079_p5), %vm243_vm0, %v230_v3  ;;  %v233_v6 = vld [vmem:[%s1844_s0 + $0x30] sm:$0xff] (!%p1079_p5) }
  0x12   : > { %248 = vst.msk [vmem:[#allocation2 + $0x20] sm:$0xff] (!%p1079_p5), %vm243_vm0, %v231_v4  ;;  %249 = vst.msk [vmem:[#allocation2 + $0x28] sm:$0xff] (!%p1079_p5), %vm243_vm0, %v232_v5  ;;  %v234_v7 = vld [vmem:[%s1844_s0 + $0x38] sm:$0xff] (!%p1079_p5)  ;;  %v235_v8 = vld [vmem:[%s1844_s0 + $0x40] sm:$0xff] (!%p1079_p5) }
  0x13   : > { %250 = vst.msk [vmem:[#allocation2 + $0x30] sm:$0xff] (!%p1079_p5), %vm243_vm0, %v233_v6  ;;  %251 = vst.msk [vmem:[#allocation2 + $0x38] sm:$0xff] (!%p1079_p5), %vm243_vm0, %v234_v7  ;;  %v236_v9 = vld [vmem:[%s1844_s0 + $0x48] sm:$0xff] (!%p1079_p5)  ;;  %v237_v10 = vld [vmem:[%s1844_s0 + $0x50] sm:$0xff] (!%p1079_p5) }
  0x14   : > { %252 = vst.msk [vmem:[#allocation2 + $0x40] sm:$0xff] (!%p1079_p5), %vm243_vm0, %v235_v8  ;;  %v238_v11 = vld [vmem:[%s1844_s0 + $0x58] sm:$0xff] (!%p1079_p5)  ;;  %253 = vst.msk [vmem:[#allocation2 + $0x48] sm:$0xff] (!%p1079_p5), %vm243_vm0, %v236_v9  ;;  %v239_v12 = vld [vmem:[%s1844_s0 + $0x60] sm:$0xff] (!%p1079_p5) }
  0x15   : > { %254 = vst.msk [vmem:[#allocation2 + $0x50] sm:$0xff] (!%p1079_p5), %vm243_vm0, %v237_v10  ;;  %255 = vst.msk [vmem:[#allocation2 + $0x58] sm:$0xff] (!%p1079_p5), %vm243_vm0, %v238_v11  ;;  %v240_v13 = vld [vmem:[%s1844_s0 + $0x68] sm:$0xff] (!%p1079_p5)  ;;  %v241_v14 = vld [vmem:[%s1844_s0 + $0x70] sm:$0xff] (!%p1079_p5) }
  0x16   : > { %256 = vst.msk [vmem:[#allocation2 + $0x60] sm:$0xff] %vm243_vm0, %v239_v12  ;;  %257 = vst.msk [vmem:[#allocation2 + $0x68] sm:$0xff] %vm243_vm0, %v240_v13  ;;  %v242_v15 = vld [vmem:[%s1844_s0 + $0x78] sm:$0xff] }
  0x17   : > { %258 = vst.msk [vmem:[#allocation2 + $0x70] sm:$0xff] %vm243_vm0, %v241_v14  ;;  %259 = vst.msk [vmem:[#allocation2 + $0x78] sm:$0xff] %vm243_vm0, %v242_v15 }
  0x18 PF: > { %s1080_s9 = sshll.u32 %s1307_s15, 5  ;;  %vm294_vm1 = vcmask 261120   ;;  %v290_v38 = vlaneseq  ;;  %s1081_s13 = sshll.u32 %s1307_s15, 2 }
  0x19   : > { %v274_v16 = vld [vmem:[#allocation2] sm:$0xff]  ;;  %s261_s12 = scalar_lea.vmem %s1845_s1, %s1080_s9  ;;  %v275_v23 = vld [vmem:[#allocation2 + $0x8] sm:$0xff]  ;;  %s272_s20 = scalar_lea.vmem %s1846_s2, %s1081_s13 }
  0x1a   : > { %1165 = vmatprep.mubr.msk.f32.mxu0 %vm294_vm1, %v274_v16  ;;  %v262_v17 = vld [vmem:[%s261_s12] sm:$0xff]  ;;  %v263_v18 = vld [vmem:[%s261_s12 + $0x8] sm:$0xff]  ;;  %v264_v19 = vld [vmem:[%s261_s12 + $0x10] sm:$0xff]  ;;  %v1457_v39 = vshrl.u32 %v290_v38, 7  ;;  %s266_s24 = scalar_lea.vmem %s1847_s3, %s1080_s9 }
  0x1b   : > { %v1221_v20 = vpack.c.bf16 %v263_v18, %v262_v17  ;;  %v265_v21 = vld [vmem:[%s261_s12 + $0x18] sm:$0xff]  ;;  %v276_v24 = vld [vmem:[#allocation2 + $0x10] sm:$0xff]  ;;  %v278_v26 = vld [vmem:[#allocation2 + $0x20] sm:$0xff] }
  0x1c   : > { %v1225_v22 = vpack.c.bf16 %v265_v21, %v264_v19  ;;  %v277_v25 = vld [vmem:[#allocation2 + $0x18] sm:$0xff]  ;;  %v279_v27 = vld [vmem:[#allocation2 + $0x28] sm:$0xff]  ;;  %v280_v28 = vld [vmem:[#allocation2 + $0x30] sm:$0xff]  ;;  %v292_v40 = vsub.s32 0, %v1457_v39 }
  0x1d   : > { %1222 = vmatprep.subr.bf16.mxu0 %v1221_v20  ;;  %v281_v29 = vld [vmem:[#allocation2 + $0x38] sm:$0xff]  ;;  %v282_v30 = vld [vmem:[#allocation2 + $0x40] sm:$0xff]  ;;  %v283_v31 = vld [vmem:[#allocation2 + $0x48] sm:$0xff] }
  0x1e   : > { %1224 = vmatpush3.bf16.msra.mxu0 %v1221_v20  ;;  %v284_v32 = vld [vmem:[#allocation2 + $0x50] sm:$0xff]  ;;  %v285_v33 = vld [vmem:[#allocation2 + $0x58] sm:$0xff]  ;;  %v1463_v41 = vld [vmem:[%s272_s20] sm:$0xf] }
  0x1f   : > { %1226 = vmatprep.subr.bf16.mxu0 %v1225_v22  ;;  %v286_v34 = vld [vmem:[#allocation2 + $0x60] sm:$0xff]  ;;  %v287_v35 = vld [vmem:[#allocation2 + $0x68] sm:$0xff]  ;;  %v288_v36 = vld [vmem:[#allocation2 + $0x70] sm:$0xff]  ;;  %v293_v42 = vrot.slane %v1463_v41, %v292_v40 }
  0x20   : > { %v289_v37 = vld [vmem:[#allocation2 + $0x78] sm:$0xff] }
  0x22   : > { %1228 = vmatpush3.bf16.msra.mxu0 %v1225_v22 }
  0x25   : > { %1166 = vmatmul.mubr.msk.f32.vlgmr.msra.gmra.mrb[0].mxu0 %vm294_vm1, %v275_v23 }
  0x26   : > { %1168 = vmatprep.mubr.msk.f32.mxu0 %vm294_vm1, %v276_v24 }
  0x29   : > { %1169 = vmatmul.mubr.msk.f32.gmra.mrb[2].mxu0 %vm294_vm1, %v277_v25 }
  0x2a   : > { %1171 = vmatprep.mubr.msk.f32.mxu0 %vm294_vm1, %v278_v26 }
  0x2d   : > { %1172 = vmatmul.mubr.msk.f32.gmra.mrb[4].mxu0 %vm294_vm1, %v279_v27 }
  0x2e   : > { %1174 = vmatprep.mubr.msk.f32.mxu0 %vm294_vm1, %v280_v28 }
  0x31   : > { %1175 = vmatmul.mubr.msk.f32.gmra.mrb[6].mxu0 %vm294_vm1, %v281_v29 }
  0x32   : > { %1177 = vmatprep.mubr.msk.f32.mxu0 %vm294_vm1, %v282_v30 }
  0x35   : > { %1178 = vmatmul.mubr.msk.f32.gmra.mrb[8].mxu0 %vm294_vm1, %v283_v31 }
  0x36   : > { %1180 = vmatprep.mubr.msk.f32.mxu0 %vm294_vm1, %v284_v32 }
  0x39   : > { %1181 = vmatmul.mubr.msk.f32.gmra.mrb[10].mxu0 %vm294_vm1, %v285_v33 }
  0x3a   : > { %1183 = vmatprep.mubr.msk.f32.mxu0 %vm294_vm1, %v286_v34 }
  0x3d   : > { %1184 = vmatmul.mubr.msk.f32.gmra.mrb[12].mxu0 %vm294_vm1, %v287_v35 }
  0x3e   : > { %1186 = vmatprep.mubr.msk.f32.mxu0 %vm294_vm1, %v288_v36 }
  0x41   : > { %1187 = vmatmul.mubr.msk.f32.gmra.mrb[14].mxu0 %vm294_vm1, %v289_v37 }
  0xf8   : > { %v1167_v43 = vpop.f32.mrb[0].mxu0 }
  0xf9   : > { %v409_v44 = vpop.f32.mrb[1].mxu0  ;;  %v1468_v46 = vadd.f32 %v1167_v43, %v293_v42 }
  0xfa   : > { %v1466_v45 = vadd.f32 %v409_v44, %v293_v42 }
  0xfb   : > { %v491_v54 = vsel %vm294_vm1, %v1468_v46, 0.0 }
  0xfc   : > { %v1170_v47 = vpop.f32.mrb[2].mxu0  ;;  %v488_v48 = vsel %vm294_vm1, %v1466_v45, 0.0 }
  0xfd   : > { %v419_v49 = vpop.f32.mrb[3].mxu0  ;;  %489 = vadd.xlane.f32.xlu0 %v488_v48  ;;  %v1474_v51 = vadd.f32 %v1170_v47, %v293_v42 }
  0xfe   : > { %v1472_v50 = vadd.f32 %v419_v49, %v293_v42 }
  0xff   : > { %v497_v59 = vsel %vm294_vm1, %v1474_v51, 0.0 }
 0x100   : > { %v1173_v52 = vpop.f32.mrb[4].mxu0  ;;  %v494_v53 = vsel %vm294_vm1, %v1472_v50, 0.0 }
 0x101   : > { %v429_v55 = vpop.f32.mrb[5].mxu0  ;;  %495 = vadd.xlane.f32.xlu1 %v494_v53  ;;  %492 = vadd.xlane.f32.xlu0 %v491_v54  ;;  %v1482_v57 = vadd.f32 %v1173_v52, %v293_v42 }
 0x102   : > { %v1480_v56 = vadd.f32 %v429_v55, %v293_v42 }
 0x103   : > { %v503_v1 = vsel %vm294_vm1, %v1482_v57, 0.0 }
 0x104   : > { %v1176_v58 = vpop.f32.mrb[6].mxu0  ;;  %v500_v60 = vsel %vm294_vm1, %v1480_v56, 0.0 }
 0x105   : > { %v439_v61 = vpop.f32.mrb[7].mxu0  ;;  %498 = vadd.xlane.f32.xlu1 %v497_v59  ;;  %501 = vadd.xlane.f32.xlu0 %v500_v60  ;;  %v1490_v63 = vadd.f32 %v1176_v58, %v293_v42 }
 0x106   : > { %v1488_v62 = vadd.f32 %v439_v61, %v293_v42 }
 0x107   : > { %v509_v7 = vsel %vm294_vm1, %v1490_v63, 0.0 }
 0x108   : > { %v1179_v0 = vpop.f32.mrb[8].mxu0  ;;  %v506_v2 = vsel %vm294_vm1, %v1488_v62, 0.0 }
 0x109   : > { %v449_v3 = vpop.f32.mrb[9].mxu0  ;;  %504 = vadd.xlane.f32.xlu1 %v503_v1  ;;  %507 = vadd.xlane.f32.xlu0 %v506_v2  ;;  %v1498_v5 = vadd.f32 %v1179_v0, %v293_v42 }
 0x10a   : > { %v1496_v4 = vadd.f32 %v449_v3, %v293_v42 }
 0x10b   : > { %v515_v13 = vsel %vm294_vm1, %v1498_v5, 0.0 }
 0x10c   : > { %v1182_v6 = vpop.f32.mrb[10].mxu0  ;;  %v512_v8 = vsel %vm294_vm1, %v1496_v4, 0.0 }
 0x10d   : > { %v459_v9 = vpop.f32.mrb[11].mxu0  ;;  %510 = vadd.xlane.f32.xlu1 %v509_v7  ;;  %513 = vadd.xlane.f32.xlu0 %v512_v8  ;;  %v1506_v11 = vadd.f32 %v1182_v6, %v293_v42 }
 0x10e   : > { %v1504_v10 = vadd.f32 %v459_v9, %v293_v42 }
 0x10f   : > { %v521_v19 = vsel %vm294_vm1, %v1506_v11, 0.0 }
 0x110   : > { %v1185_v12 = vpop.f32.mrb[12].mxu0  ;;  %v518_v14 = vsel %vm294_vm1, %v1504_v10, 0.0 }
 0x111   : > { %v469_v15 = vpop.f32.mrb[13].mxu0  ;;  %516 = vadd.xlane.f32.xlu1 %v515_v13  ;;  %519 = vadd.xlane.f32.xlu0 %v518_v14  ;;  %v1514_v17 = vadd.f32 %v1185_v12, %v293_v42 }
 0x112   : > { %v1512_v16 = vadd.f32 %v469_v15, %v293_v42 }
 0x113   : > { %v527_v24 = vsel %vm294_vm1, %v1514_v17, 0.0 }
 0x114   : > { %v1188_v18 = vpop.f32.mrb[14].mxu0  ;;  %v524_v20 = vsel %vm294_vm1, %v1512_v16, 0.0 }
 0x115   : > { %v479_v21 = vpop.f32.mrb[15].mxu0  ;;  %522 = vadd.xlane.f32.xlu1 %v521_v19  ;;  %525 = vadd.xlane.f32.xlu0 %v524_v20  ;;  %v1522_v23 = vadd.f32 %v1188_v18, %v293_v42 }
 0x116   : > { %v1520_v22 = vadd.f32 %v479_v21, %v293_v42 }
 0x117   : > { %v533_v26 = vsel %vm294_vm1, %v1522_v23, 0.0 }
 0x118   : > { %v530_v25 = vsel %vm294_vm1, %v1520_v22, 0.0 }
 0x119   : > { %528 = vadd.xlane.f32.xlu1 %v527_v24  ;;  %531 = vadd.xlane.f32.xlu0 %v530_v25 }
 0x11d   : > { %534 = vadd.xlane.f32.xlu1 %v533_v26 }
 0x18a   : > { %v490_v27 = vpop.xlane.xlu0 %489 }
 0x18b   : > { %v537_v28 = vmul.f32 0.03125, %v490_v27 }
 0x18d   : > { %v1531_v29 = vsub.f32 %v1466_v45, %v537_v28 }
 0x18e   : > { %v496_v30 = vpop.xlane.xlu1 %495  ;;  %v493_v31 = vpop.xlane.xlu0 %492 }
 0x18f   : > { %v539_v32 = vmul.f32 0.03125, %v496_v30  ;;  %v538_v33 = vmul.f32 0.03125, %v493_v31  ;;  %v569_v34 = vmul.f32 %v1531_v29, %v1531_v29 }
 0x191   : > { %v1536_v35 = vsub.f32 %v1472_v50, %v539_v32  ;;  %v1539_v36 = vsub.f32 %v1468_v46, %v538_v33  ;;  %v585_v37 = vsel %vm294_vm1, %v569_v34, 0.0 }
 0x192   : > { %v499_v38 = vpop.xlane.xlu1 %498  ;;  %586 = vadd.xlane.f32.xlu0 %v585_v37  ;;  %v502_v40 = vpop.xlane.xlu0 %501 }
 0x193   : > { %v540_v42 = vmul.f32 0.03125, %v499_v38  ;;  %v541_v43 = vmul.f32 0.03125, %v502_v40  ;;  %v571_v44 = vmul.f32 %v1536_v35, %v1536_v35  ;;  %v570_v45 = vmul.f32 %v1539_v36, %v1539_v36 }
 0x195   : > { %v1547_v47 = vsub.f32 %v1474_v51, %v540_v42  ;;  %v1550_v48 = vsub.f32 %v1480_v56, %v541_v43  ;;  %v591_v46 = vsel %vm294_vm1, %v571_v44, 0.0  ;;  %v588_v49 = vsel %vm294_vm1, %v570_v45, 0.0 }
 0x196   : > { %v505_v50 = vpop.xlane.xlu1 %504  ;;  %592 = vadd.xlane.f32.xlu0 %v591_v46  ;;  %589 = vadd.xlane.f32.xlu1 %v588_v49  ;;  %v508_v52 = vpop.xlane.xlu0 %507 }
 0x197   : > { %v542_v53 = vmul.f32 0.03125, %v505_v50  ;;  %v543_v54 = vmul.f32 0.03125, %v508_v52  ;;  %v572_v55 = vmul.f32 %v1547_v47, %v1547_v47  ;;  %v573_v51 = vmul.f32 %v1550_v48, %v1550_v48 }
 0x199   : > { %v1559_v58 = vsub.f32 %v1482_v57, %v542_v53  ;;  %v1562_v56 = vsub.f32 %v1488_v62, %v543_v54  ;;  %v594_v59 = vsel %vm294_vm1, %v572_v55, 0.0  ;;  %v597_v60 = vsel %vm294_vm1, %v573_v51, 0.0  ;;  %v267_v53 = vld [vmem:[%s266_s24] sm:$0xff]  ;;  %v268_v54 = vld [vmem:[%s266_s24 + $0x8] sm:$0xff]  ;;  %v269_v51 = vld [vmem:[%s266_s24 + $0x10] sm:$0xff] }
 0x19a   : > { %v511_v61 = vpop.xlane.xlu1 %510  ;;  %595 = vadd.xlane.f32.xlu1 %v594_v59  ;;  %598 = vadd.xlane.f32.xlu0 %v597_v60  ;;  %v514_v0 = vpop.xlane.xlu0 %513  ;;  %v1229_v55 = vpack.c.bf16 %v268_v54, %v267_v53  ;;  %v270_v59 = vld [vmem:[%s266_s24 + $0x18] sm:$0xff] }
 0x19b   : > { %v544_v1 = vmul.f32 0.03125, %v511_v61  ;;  %v545_v2 = vmul.f32 0.03125, %v514_v0  ;;  %v574_v3 = vmul.f32 %v1559_v58, %v1559_v58  ;;  %v575_v57 = vmul.f32 %v1562_v56, %v1562_v56 }
 0x19c   : > { %1230 = vmatprep.subr.bf16.mxu1 %v1229_v55  ;;  %v1233_v60 = vpack.c.bf16 %v270_v59, %v269_v51 }
 0x19d   : > { %v1571_v6 = vsub.f32 %v1490_v63, %v544_v1  ;;  %v1574_v62 = vsub.f32 %v1496_v4, %v545_v2  ;;  %v600_v7 = vsel %vm294_vm1, %v574_v3, 0.0  ;;  %v603_v8 = vsel %vm294_vm1, %v575_v57, 0.0  ;;  %1232 = vmatpush3.bf16.msra.mxu1 %v1229_v55 }
 0x19e   : > { %v517_v9 = vpop.xlane.xlu1 %516  ;;  %601 = vadd.xlane.f32.xlu1 %v600_v7  ;;  %604 = vadd.xlane.f32.xlu0 %v603_v8  ;;  %v520_v12 = vpop.xlane.xlu0 %519 }
 0x19f   : > { %v546_v13 = vmul.f32 0.03125, %v517_v9  ;;  %v547_v14 = vmul.f32 0.03125, %v520_v12  ;;  %v576_v15 = vmul.f32 %v1571_v6, %v1571_v6  ;;  %v577_v63 = vmul.f32 %v1574_v62, %v1574_v62  ;;  %1234 = vmatprep.subr.bf16.mxu1 %v1233_v60 }
 0x1a1   : > { %v1583_v18 = vsub.f32 %v1498_v5, %v546_v13  ;;  %v1586_v4 = vsub.f32 %v1504_v10, %v547_v14  ;;  %v606_v19 = vsel %vm294_vm1, %v576_v15, 0.0  ;;  %v609_v20 = vsel %vm294_vm1, %v577_v63, 0.0  ;;  %1236 = vmatpush3.bf16.msra.mxu1 %v1233_v60 }
 0x1a2   : > { %v523_v21 = vpop.xlane.xlu1 %522  ;;  %607 = vadd.xlane.f32.xlu1 %v606_v19  ;;  %610 = vadd.xlane.f32.xlu0 %v609_v20  ;;  %v526_v24 = vpop.xlane.xlu0 %525  ;;  %v699_v63 = vsub.s32 1, %v1457_v39 }
 0x1a3   : > { %v548_v25 = vmul.f32 0.03125, %v523_v21  ;;  %v549_v26 = vmul.f32 0.03125, %v526_v24  ;;  %v578_v27 = vmul.f32 %v1583_v18, %v1583_v18  ;;  %v579_v5 = vmul.f32 %v1586_v4, %v1586_v4 }
 0x1a5   : > { %v1595_v28 = vsub.f32 %v1506_v11, %v548_v25  ;;  %v1598_v10 = vsub.f32 %v1512_v16, %v549_v26  ;;  %v612_v30 = vsel %vm294_vm1, %v578_v27, 0.0  ;;  %v615_v31 = vsel %vm294_vm1, %v579_v5, 0.0 }
 0x1a6   : > { %v529_v32 = vpop.xlane.xlu1 %528  ;;  %613 = vadd.xlane.f32.xlu1 %v612_v30  ;;  %616 = vadd.xlane.f32.xlu0 %v615_v31  ;;  %v532_v33 = vpop.xlane.xlu0 %531  ;;  %v719_v25 = vsub.s32 2, %v1457_v39  ;;  %v1634_v5 = vrot.slane %v1463_v41, %v699_v63 }
 0x1a7   : > { %v550_v34 = vmul.f32 0.03125, %v529_v32  ;;  %v551_v37 = vmul.f32 0.03125, %v532_v33  ;;  %v580_v38 = vmul.f32 %v1595_v28, %v1595_v28  ;;  %v581_v11 = vmul.f32 %v1598_v10, %v1598_v10 }
 0x1a9   : > { %v1607_v16 = vsub.f32 %v1514_v17, %v550_v34  ;;  %v1610_v40 = vsub.f32 %v1520_v22, %v551_v37  ;;  %v618_v42 = vsel %vm294_vm1, %v580_v38, 0.0  ;;  %v621_v43 = vsel %vm294_vm1, %v581_v11, 0.0 }
 0x1aa   : > { %v535_v44 = vpop.xlane.xlu1 %534  ;;  %619 = vadd.xlane.f32.xlu1 %v618_v42  ;;  %622 = vadd.xlane.f32.xlu0 %v621_v43  ;;  %v1638_v38 = vrot.slane %v1463_v41, %v719_v25 }
 0x1ab   : > { %v552_v45 = vmul.f32 0.03125, %v535_v44  ;;  %v582_v46 = vmul.f32 %v1607_v16, %v1607_v16  ;;  %v583_v49 = vmul.f32 %v1610_v40, %v1610_v40 }
 0x1ad   : > { %v1619_v17 = vsub.f32 %v1522_v23, %v552_v45  ;;  %v624_v22 = vsel %vm294_vm1, %v582_v46, 0.0  ;;  %v627_v50 = vsel %vm294_vm1, %v583_v49, 0.0 }
 0x1ae   : > { %625 = vadd.xlane.f32.xlu1 %v624_v22  ;;  %628 = vadd.xlane.f32.xlu0 %v627_v50 }
 0x1af   : > { %v584_v52 = vmul.f32 %v1619_v17, %v1619_v17 }
 0x1b1   : > { %v630_v23 = vsel %vm294_vm1, %v584_v52, 0.0 }
 0x1b2   : > { %631 = vadd.xlane.f32.xlu1 %v630_v23 }
 0x21f   : > { %v587_v61 = vpop.xlane.xlu0 %586 }
 0x220   : > { %v633_v0 = vmul.f32 0.03125, %v587_v61 }
 0x222   : > { %v649_v1 = vadd.f32 1e-05, %v633_v0 }
 0x223   : > { %v590_v2 = vpop.xlane.xlu1 %589  ;;  %v593_v3 = vpop.xlane.xlu0 %592 }
 0x224   : > { %1261 = vrsqrt.f32 %v649_v1  ;;  %v634_v57 = vmul.f32 0.03125, %v590_v2  ;;  %v635_v7 = vmul.f32 0.03125, %v593_v3 }
 0x226   : > { %v650_v8 = vadd.f32 1e-05, %v634_v57  ;;  %v651_v9 = vadd.f32 1e-05, %v635_v7 }
 0x227   : > { %v596_v12 = vpop.xlane.xlu1 %595  ;;  %v599_v13 = vpop.xlane.xlu0 %598 }
 0x228   : > { %1263 = vrsqrt.f32 %v650_v8  ;;  %v636_v14 = vmul.f32 0.03125, %v596_v12  ;;  %v637_v15 = vmul.f32 0.03125, %v599_v13 }
 0x229   : > { %1265 = vrsqrt.f32 %v651_v9 }
 0x22a   : > { %v652_v19 = vadd.f32 1e-05, %v636_v14  ;;  %v653_v20 = vadd.f32 1e-05, %v637_v15 }
 0x22b   : > { %v602_v21 = vpop.xlane.xlu1 %601  ;;  %v605_v24 = vpop.xlane.xlu0 %604 }
 0x22c   : > { %1267 = vrsqrt.f32 %v652_v19  ;;  %v638_v26 = vmul.f32 0.03125, %v602_v21  ;;  %v639_v27 = vmul.f32 0.03125, %v605_v24 }
 0x22d   : > { %1269 = vrsqrt.f32 %v653_v20 }
 0x22e   : > { %v1262_v30 = vpop.eup %1261  ;;  %v654_v31 = vadd.f32 1e-05, %v638_v26  ;;  %v655_v32 = vadd.f32 1e-05, %v639_v27 }
 0x22f   : > { %v608_v33 = vpop.xlane.xlu1 %607  ;;  %v611_v34 = vpop.xlane.xlu0 %610  ;;  %v681_v37 = vmul.f32 %v1262_v30, %v1531_v29 }
 0x230   : > { %1271 = vrsqrt.f32 %v654_v31  ;;  %v640_v11 = vmul.f32 0.03125, %v608_v33  ;;  %v641_v42 = vmul.f32 0.03125, %v611_v34 }
 0x231   : > { %1273 = vrsqrt.f32 %v655_v32  ;;  %v701_v43 = vmul.f32 %v1634_v5, %v681_v37 }
 0x232   : > { %v1264_v44 = vpop.eup %1263  ;;  %v656_v45 = vadd.f32 1e-05, %v640_v11  ;;  %v657_v46 = vadd.f32 1e-05, %v641_v42 }
 0x233   : > { %v1266_v49 = vpop.eup %1265  ;;  %v614_v22 = vpop.xlane.xlu1 %613  ;;  %v1642_v52 = vadd.f32 %v1638_v38, %v701_v43  ;;  %v682_v29 = vmul.f32 %v1264_v44, %v1539_v36 }
 0x234   : > { %v617_v50 = vpop.xlane.xlu0 %616  ;;  %1275 = vrsqrt.f32 %v656_v45  ;;  %v642_v53 = vmul.f32 0.03125, %v614_v22  ;;  %v683_v55 = vmul.f32 %v1266_v49, %v1536_v35 }
 0x235   : > { %v643_v54 = vmul.f32 0.03125, %v617_v50  ;;  %1277 = vrsqrt.f32 %v657_v46  ;;  %1197 = vmatprep.mubr.msk.f32.mxu1 %vm294_vm1, %v1642_v52  ;;  %v702_v23 = vmul.f32 %v1634_v5, %v682_v29 }
 0x236   : > { %v1268_v51 = vpop.eup %1267  ;;  %v658_v59 = vadd.f32 1e-05, %v642_v53  ;;  %v703_v61 = vmul.f32 %v1634_v5, %v683_v55 }
 0x237   : > { %v659_v60 = vadd.f32 1e-05, %v643_v54  ;;  %v1270_v0 = vpop.eup %1269  ;;  %v620_v1 = vpop.xlane.xlu1 %619  ;;  %v1651_v36 = vadd.f32 %v1638_v38, %v702_v23  ;;  %v684_v3 = vmul.f32 %v1268_v51, %v1547_v47 }
 0x238   : > { %v623_v2 = vpop.xlane.xlu0 %622  ;;  %1279 = vrsqrt.f32 %v658_v59  ;;  %v644_v35 = vmul.f32 0.03125, %v620_v1  ;;  %v1655_v7 = vadd.f32 %v1638_v38, %v703_v61  ;;  %v685_v9 = vmul.f32 %v1270_v0, %v1550_v48 }
 0x239   : > { %v645_v57 = vmul.f32 0.03125, %v623_v2  ;;  %1281 = vrsqrt.f32 %v659_v60  ;;  %1198 = vmatmul.mubr.msk.f32.vlgmr.msra.gmra.mrb[0].mxu1 %vm294_vm1, %v1651_v36  ;;  %v704_v8 = vmul.f32 %v1634_v5, %v684_v3 }
 0x23a   : > { %v1272_v12 = vpop.eup %1271  ;;  %v660_v13 = vadd.f32 1e-05, %v644_v35  ;;  %1200 = vmatprep.mubr.msk.f32.mxu1 %vm294_vm1, %v1655_v7  ;;  %v705_v20 = vmul.f32 %v1634_v5, %v685_v9 }
 0x23b   : > { %v661_v14 = vadd.f32 1e-05, %v645_v57  ;;  %v1274_v47 = vpop.eup %1273  ;;  %v626_v15 = vpop.xlane.xlu1 %625  ;;  %v1664_v19 = vadd.f32 %v1638_v38, %v704_v8  ;;  %v686_v21 = vmul.f32 %v1272_v12, %v1559_v58 }
 0x23c   : > { %v629_v63 = vpop.xlane.xlu0 %628  ;;  %1283 = vrsqrt.f32 %v660_v13  ;;  %v646_v24 = vmul.f32 0.03125, %v626_v15  ;;  %v687_v48 = vmul.f32 %v1274_v47, %v1562_v56  ;;  %v1672_v26 = vadd.f32 %v1638_v38, %v705_v20 }
 0x23d   : > { %v647_v25 = vmul.f32 0.03125, %v629_v63  ;;  %1285 = vrsqrt.f32 %v661_v14  ;;  %1201 = vmatmul.mubr.msk.f32.gmra.mrb[2].mxu1 %vm294_vm1, %v1664_v19  ;;  %v706_v27 = vmul.f32 %v1634_v5, %v686_v21 }
 0x23e   : > { %v1276_v30 = vpop.eup %1275  ;;  %v662_v31 = vadd.f32 1e-05, %v646_v24  ;;  %v707_v33 = vmul.f32 %v1634_v5, %v687_v48  ;;  %1203 = vmatprep.mubr.msk.f32.mxu1 %vm294_vm1, %v1672_v26 }
 0x23f   : > { %v663_v32 = vadd.f32 1e-05, %v647_v25  ;;  %v1278_v58 = vpop.eup %1277  ;;  %v632_v34 = vpop.xlane.xlu1 %631  ;;  %v1679_v56 = vadd.f32 %v1638_v38, %v706_v27  ;;  %v688_v37 = vmul.f32 %v1276_v30, %v1571_v6 }
 0x240   : > { %1287 = vrsqrt.f32 %v662_v31  ;;  %v648_v11 = vmul.f32 0.03125, %v632_v34  ;;  %v1683_v42 = vadd.f32 %v1638_v38, %v707_v33  ;;  %v689_v43 = vmul.f32 %v1278_v58, %v1574_v62 }
 0x241   : > { %1289 = vrsqrt.f32 %v663_v32  ;;  %1204 = vmatmul.mubr.msk.f32.gmra.mrb[4].mxu1 %vm294_vm1, %v1679_v56  ;;  %v708_v44 = vmul.f32 %v1634_v5, %v688_v37 }
 0x242   : > { %v1280_v45 = vpop.eup %1279  ;;  %v664_v46 = vadd.f32 1e-05, %v648_v11  ;;  %1206 = vmatprep.mubr.msk.f32.mxu1 %vm294_vm1, %v1683_v42  ;;  %v709_v6 = vmul.f32 %v1634_v5, %v689_v43 }
 0x243   : > { %v1282_v49 = vpop.eup %1281  ;;  %v1693_v22 = vadd.f32 %v1638_v38, %v708_v44  ;;  %v690_v50 = vmul.f32 %v1280_v45, %v1583_v18 }
 0x244   : > { %1291 = vrsqrt.f32 %v664_v46  ;;  %v1697_v62 = vadd.f32 %v1638_v38, %v709_v6  ;;  %v691_v29 = vmul.f32 %v1282_v49, %v1586_v4 }
 0x245   : > { %1207 = vmatmul.mubr.msk.f32.gmra.mrb[6].mxu1 %vm294_vm1, %v1693_v22  ;;  %v710_v53 = vmul.f32 %v1634_v5, %v690_v50 }
 0x246   : > { %v1284_v54 = vpop.eup %1283  ;;  %1209 = vmatprep.mubr.msk.f32.mxu1 %vm294_vm1, %v1697_v62  ;;  %v711_v55 = vmul.f32 %v1634_v5, %v691_v29 }
 0x247   : > { %v1286_v23 = vpop.eup %1285  ;;  %v1707_v18 = vadd.f32 %v1638_v38, %v710_v53  ;;  %v692_v51 = vmul.f32 %v1284_v54, %v1595_v28 }
 0x248   : > { %v1711_v59 = vadd.f32 %v1638_v38, %v711_v55  ;;  %v693_v4 = vmul.f32 %v1286_v23, %v1598_v10 }
 0x249   : > { %1210 = vmatmul.mubr.msk.f32.gmra.mrb[8].mxu1 %vm294_vm1, %v1707_v18  ;;  %v712_v60 = vmul.f32 %v1634_v5, %v692_v51 }
 0x24a   : > { %v1288_v61 = vpop.eup %1287  ;;  %1212 = vmatprep.mubr.msk.f32.mxu1 %vm294_vm1, %v1711_v59  ;;  %v713_v0 = vmul.f32 %v1634_v5, %v693_v4 }
 0x24b   : > { %v1290_v1 = vpop.eup %1289  ;;  %v1721_v2 = vadd.f32 %v1638_v38, %v712_v60  ;;  %v694_v28 = vmul.f32 %v1288_v61, %v1607_v16 }
 0x24c   : > { %v1725_v3 = vadd.f32 %v1638_v38, %v713_v0  ;;  %v695_v10 = vmul.f32 %v1290_v1, %v1610_v40 }
 0x24d   : > { %1213 = vmatmul.mubr.msk.f32.gmra.mrb[10].mxu1 %vm294_vm1, %v1721_v2  ;;  %v714_v35 = vmul.f32 %v1634_v5, %v694_v28 }
 0x24e   : > { %v1292_v57 = vpop.eup %1291  ;;  %1215 = vmatprep.mubr.msk.f32.mxu1 %vm294_vm1, %v1725_v3  ;;  %v715_v8 = vmul.f32 %v1634_v5, %v695_v10 }
 0x24f   : > { %v1735_v9 = vadd.f32 %v1638_v38, %v714_v35  ;;  %v696_v16 = vmul.f32 %v1292_v57, %v1619_v17  ;;  %v739_v17 = vsub.s32 3, %v1457_v39 }
 0x250   : > { %v1739_v12 = vadd.f32 %v1638_v38, %v715_v8 }
 0x251   : > { %1216 = vmatmul.mubr.msk.f32.gmra.mrb[12].mxu1 %vm294_vm1, %v1735_v9  ;;  %v716_v40 = vmul.f32 %v1634_v5, %v696_v16  ;;  %v1753_v14 = vrot.slane %v1463_v41, %v739_v17 }
 0x252   : > { %1218 = vmatprep.mubr.msk.f32.mxu1 %vm294_vm1, %v1739_v12 }
 0x253   : > { %v1747_v13 = vadd.f32 %v1638_v38, %v716_v40 }
 0x255   : > { %1219 = vmatmul.mubr.msk.f32.gmra.mrb[14].mxu1 %vm294_vm1, %v1747_v13 }
 0x30c   : > { %v1199_v47 = vpop.f32.mrb[0].mxu1 }
 0x30d   : > { %v861_v15 = vadd.f32 %v1199_v47, %v1753_v14  ;;  %v855_v63 = vpop.f32.mrb[1].mxu1 }
 0x30e   : > { %v856_v5 = vadd.f32 %v855_v63, %v1753_v14 }
 0x30f   : > { %v935_v20 = vadd.f32 %v861_v15, %v1651_v36 }
 0x310   : > { %v934_v38 = vadd.f32 %v856_v5, %v1642_v52  ;;  %v1202_v21 = vpop.f32.mrb[2].mxu1 }
 0x311   : > { %951 = vst.msk [vmem:[#allocation2 + $0x8] sm:$0xff] %vm294_vm1, %v935_v20  ;;  %967 = vst.msk [vmem:[%s1367_s23 + $0x8] sm:$0xff] %vm294_vm1, %v935_v20  ;;  %v871_v39 = vadd.f32 %v1202_v21, %v1753_v14  ;;  %v865_v41 = vpop.f32.mrb[3].mxu1 }
 0x312   : > { %950 = vst.msk [vmem:[#allocation2] sm:$0xff] %vm294_vm1, %v934_v38  ;;  %966 = vst.msk [vmem:[%s1367_s23] sm:$0xff] %vm294_vm1, %v934_v38  ;;  %v866_v24 = vadd.f32 %v865_v41, %v1753_v14 }
 0x313   : > { %v937_v36 = vadd.f32 %v871_v39, %v1664_v19 }
 0x314   : > { %v936_v52 = vadd.f32 %v866_v24, %v1655_v7  ;;  %v1205_v25 = vpop.f32.mrb[4].mxu1 }
 0x315   : > { %953 = vst.msk [vmem:[#allocation2 + $0x18] sm:$0xff] %vm294_vm1, %v937_v36  ;;  %969 = vst.msk [vmem:[%s1367_s23 + $0x18] sm:$0xff] %vm294_vm1, %v937_v36  ;;  %v881_v48 = vadd.f32 %v1205_v25, %v1753_v14  ;;  %v875_v27 = vpop.f32.mrb[5].mxu1 }
 0x316   : > { %952 = vst.msk [vmem:[#allocation2 + $0x10] sm:$0xff] %vm294_vm1, %v936_v52  ;;  %968 = vst.msk [vmem:[%s1367_s23 + $0x10] sm:$0xff] %vm294_vm1, %v936_v52  ;;  %v876_v30 = vadd.f32 %v875_v27, %v1753_v14 }
 0x317   : > { %v939_v19 = vadd.f32 %v881_v48, %v1679_v56 }
 0x318   : > { %v938_v7 = vadd.f32 %v876_v30, %v1672_v26  ;;  %v1208_v31 = vpop.f32.mrb[6].mxu1 }
 0x319   : > { %955 = vst.msk [vmem:[#allocation2 + $0x28] sm:$0xff] %vm294_vm1, %v939_v19  ;;  %971 = vst.msk [vmem:[%s1367_s23 + $0x28] sm:$0xff] %vm294_vm1, %v939_v19  ;;  %v891_v32 = vadd.f32 %v1208_v31, %v1753_v14  ;;  %v885_v33 = vpop.f32.mrb[7].mxu1 }
 0x31a   : > { %954 = vst.msk [vmem:[#allocation2 + $0x20] sm:$0xff] %vm294_vm1, %v938_v7  ;;  %970 = vst.msk [vmem:[%s1367_s23 + $0x20] sm:$0xff] %vm294_vm1, %v938_v7  ;;  %v886_v58 = vadd.f32 %v885_v33, %v1753_v14 }
 0x31b   : > { %v941_v34 = vadd.f32 %v891_v32, %v1693_v22 }
 0x31c   : > { %v940_v26 = vadd.f32 %v886_v58, %v1683_v42  ;;  %v1211_v56 = vpop.f32.mrb[8].mxu1 }
 0x31d   : > { %957 = vst.msk [vmem:[#allocation2 + $0x38] sm:$0xff] %vm294_vm1, %v941_v34  ;;  %973 = vst.msk [vmem:[%s1367_s23 + $0x38] sm:$0xff] %vm294_vm1, %v941_v34  ;;  %v901_v37 = vadd.f32 %v1211_v56, %v1753_v14  ;;  %v895_v11 = vpop.f32.mrb[9].mxu1 }
 0x31e   : > { %956 = vst.msk [vmem:[#allocation2 + $0x30] sm:$0xff] %vm294_vm1, %v940_v26  ;;  %972 = vst.msk [vmem:[%s1367_s23 + $0x30] sm:$0xff] %vm294_vm1, %v940_v26  ;;  %v896_v43 = vadd.f32 %v895_v11, %v1753_v14 }
 0x31f   : > { %v943_v44 = vadd.f32 %v901_v37, %v1707_v18 }
 0x320   : > { %v942_v42 = vadd.f32 %v896_v43, %v1697_v62  ;;  %v1214_v45 = vpop.f32.mrb[10].mxu1 }
 0x321   : > { %959 = vst.msk [vmem:[#allocation2 + $0x48] sm:$0xff] %vm294_vm1, %v943_v44  ;;  %975 = vst.msk [vmem:[%s1367_s23 + $0x48] sm:$0xff] %vm294_vm1, %v943_v44  ;;  %v911_v46 = vadd.f32 %v1214_v45, %v1753_v14  ;;  %v905_v6 = vpop.f32.mrb[11].mxu1 }
 0x322   : > { %958 = vst.msk [vmem:[#allocation2 + $0x40] sm:$0xff] %vm294_vm1, %v942_v42  ;;  %974 = vst.msk [vmem:[%s1367_s23 + $0x40] sm:$0xff] %vm294_vm1, %v942_v42  ;;  %v906_v49 = vadd.f32 %v905_v6, %v1753_v14 }
 0x323   : > { %v945_v22 = vadd.f32 %v911_v46, %v1721_v2 }
 0x324   : > { %v944_v50 = vadd.f32 %v906_v49, %v1711_v59  ;;  %v1217_v62 = vpop.f32.mrb[12].mxu1 }
 0x325   : > { %961 = vst.msk [vmem:[#allocation2 + $0x58] sm:$0xff] %vm294_vm1, %v945_v22  ;;  %977 = vst.msk [vmem:[%s1367_s23 + $0x58] sm:$0xff] %vm294_vm1, %v945_v22  ;;  %v921_v29 = vadd.f32 %v1217_v62, %v1753_v14  ;;  %v915_v53 = vpop.f32.mrb[13].mxu1 }
 0x326   : > { %960 = vst.msk [vmem:[#allocation2 + $0x50] sm:$0xff] %vm294_vm1, %v944_v50  ;;  %976 = vst.msk [vmem:[%s1367_s23 + $0x50] sm:$0xff] %vm294_vm1, %v944_v50  ;;  %v916_v54 = vadd.f32 %v915_v53, %v1753_v14 }
 0x327   : > { %v947_v55 = vadd.f32 %v921_v29, %v1735_v9 }
 0x328   : > { %v946_v23 = vadd.f32 %v916_v54, %v1725_v3  ;;  %v1220_v18 = vpop.f32.mrb[14].mxu1 }
 0x329   : > { %963 = vst.msk [vmem:[#allocation2 + $0x68] sm:$0xff] %vm294_vm1, %v947_v55  ;;  %979 = vst.msk [vmem:[%s1367_s23 + $0x68] sm:$0xff] %vm294_vm1, %v947_v55  ;;  %v931_v51 = vadd.f32 %v1220_v18, %v1753_v14  ;;  %v925_v59 = vpop.f32.mrb[15].mxu1 }
 0x32a   : > { %962 = vst.msk [vmem:[#allocation2 + $0x60] sm:$0xff] %vm294_vm1, %v946_v23  ;;  %978 = vst.msk [vmem:[%s1367_s23 + $0x60] sm:$0xff] %vm294_vm1, %v946_v23  ;;  %v926_v4 = vadd.f32 %v925_v59, %v1753_v14 }
 0x32b   : > { %v949_v60 = vadd.f32 %v931_v51, %v1747_v13 }
 0x32c   : > { %v948_v61 = vadd.f32 %v926_v4, %v1739_v12 }
 0x32d   : > { %965 = vst.msk [vmem:[#allocation2 + $0x78] sm:$0xff] %vm294_vm1, %v949_v60  ;;  %981 = vst.msk [vmem:[%s1367_s23 + $0x78] sm:$0xff] %vm294_vm1, %v949_v60 }
 0x32e   : > { %964 = vst.msk [vmem:[#allocation2 + $0x70] sm:$0xff] %vm294_vm1, %v948_v61  ;;  %980 = vst.msk [vmem:[%s1367_s23 + $0x70] sm:$0xff] %vm294_vm1, %v948_v61 }
 0x32f PF: > { %s14_s17 = sadd.s32 1, %s1315_s17   ;;  %s1849_s15 = smov %s1311_s16 }
 0x330   : > { %p11_p6 = scmp.ge.s32.totalorder %s14_s17, 4   ;;  %s1850_s16 = smov %s1852_s18 }
 0x332   :  { %13 = sbr.rel (!%p11_p6) target bundleno = 2 (0x2), region = 73 }

</bundles_post_ra>
